<compile_context>
chip_gen: v7x
topology: tpu7x:2x2x1
jax: 0.10.0
libtpu: 0.0.40
codegen_flags: <defaults>
</compile_context>

<pallas_src>
import functools

import jax
import jax.numpy as jnp
from jax.experimental import pallas as pl
from jax.experimental.pallas import tpu as pltpu


def _fused_kernel(x_ref, p_ref, g_ref, b_ref, o_ref, *, n_blk, inv_count, eps, mxu_dtype):
    """One grid step = one channel x one batch slab (natural layouts).

    x_ref : (n_blk, 1, T, V) VMEM   input slab of channel `ci`
    p_ref : (V, W)           VMEM   projection matrix (resident)
    g_ref : (C,)             SMEM   BN gamma
    b_ref : (C,)             SMEM   BN beta
    o_ref : (N, 1, T, W)     VMEM   per-channel output, resident across the batch
                                    grid axis; written back once per channel
    """
    ci = pl.program_id(0)
    ni = pl.program_id(1)

    # Project this slab.  Per-sample 2-D matmuls: no reshapes that touch the
    # tiled (sublane, lane) dims, and each result is stored immediately so the
    # unrolled loop keeps live ranges tiny (no vreg-spill blowup).
    p_mx = p_ref[...].astype(mxu_dtype)
    row0 = pl.multiple_of(ni * n_blk, n_blk)
    for i in range(n_blk):
        xs = x_ref[i, 0].astype(mxu_dtype)                           # (T, V)
        ys = jnp.dot(xs, p_mx, preferred_element_type=jnp.float32)   # (T, W)
        o_ref[row0 + i, 0] = ys.astype(o_ref.dtype)

    # After the last batch slab of this channel: BatchNorm2d (training-mode
    # batch statistics) over the resident per-channel block, normalized in place.
    @pl.when(ni == pl.num_programs(1) - 1)
    def _finalize():
        y = o_ref[...].astype(jnp.float32)                           # (N, 1, T, W)
        mean = jnp.sum(y) * inv_count
        d = y - mean
        var = jnp.sum(d * d) * inv_count                             # centered two-pass
        scale = g_ref[ci] * jax.lax.rsqrt(var + eps)
        o_ref[...] = (d * scale + b_ref[ci]).astype(o_ref.dtype)


def _apply_kernel(x_ref, p_ref, sc_ref, sh_ref, o_ref, *, n_blk, mxu_dtype):
    """Fallback streaming kernel: project + precomputed per-channel affine.

    x_ref : (n_blk, 1, T, V) VMEM ; o_ref : (n_blk, 1, T, W) VMEM
    sc_ref / sh_ref : (C,) SMEM (scale / shift derived from batch statistics)
    """
    ci = pl.program_id(0)
    scale = sc_ref[ci]
    shift = sh_ref[ci]
    p_mx = p_ref[...].astype(mxu_dtype)
    for i in range(n_blk):
        xs = x_ref[i, 0].astype(mxu_dtype)                           # (T, V)
        ys = jnp.dot(xs, p_mx, preferred_element_type=jnp.float32)   # (T, W)
        o_ref[i, 0] = (ys * scale + shift).astype(o_ref.dtype)


def _vmem_limit_bytes():
    cap = 128 * 1024 * 1024
    try:
        cap = int(pltpu.get_tpu_info().vmem_capacity_bytes)
    except Exception:
        pass
    # v5e / v6e (128 MiB physical) -> 96 MiB scoped; v7x (64 MiB) -> 48 MiB.
    return int(min(0.75 * cap, 100 * 1024 * 1024))


def _pick_n_block(n, t, v, itemsize, *, max_slabs=64, max_rows=4096, max_bytes=1 << 20):
    """Largest divisor of N such that one x slab-block stays cheap to unroll
    (<= max_slabs samples) and to double-buffer (<= max_bytes)."""
    cap = max(
        1,
        min(max_slabs, max_rows // max(t, 1), max_bytes // max(t * v * itemsize, 1)),
    )
    best = 1
    for d in range(1, n + 1):
        if n % d == 0 and d <= cap:
            best = d
    return best


def joint_project(x, proj_mat, gamma, beta, *, eps=1e-5, mxu_dtype=None, force_two_pass=False):
    """Forward of JointProject:
        y = BatchNorm2d_train((x.view(n, c*t, v) @ proj_mat).view(n, c, t, w))
    x: (N, C, T, V); proj_mat: (V, W); gamma/beta: (C,).  Output: (N, C, T, W), x.dtype.
    """
    n, c, t, v = x.shape
    w = proj_mat.shape[-1]
    out_dtype = x.dtype
    if mxu_dtype is None:
        # bf16 inputs -> single-pass bf16 MXU; f32 inputs keep the f32 MXU path so
        # the output tracks the f32 reference tightly.  Pass jnp.bfloat16
        # explicitly (e.g. on v7x) when ~1e-3 relative error is acceptable.
        mxu_dtype = jnp.bfloat16 if x.dtype == jnp.bfloat16 else jnp.float32

    p = proj_mat.astype(jnp.float32)
    g = gamma.astype(jnp.float32).reshape(c)
    b = beta.astype(jnp.float32).reshape(c)

    vmem_limit = _vmem_limit_bytes()
    n_blk = _pick_n_block(n, t, v, x.dtype.itemsize)
    nsteps = n // n_blk

    count = n * t * w
    flops = 2 * n * c * t * v * w + 6 * n * c * t * w
    bytes_accessed = (
        x.size * x.dtype.itemsize + n * c * t * w * x.dtype.itemsize + p.size * 4
    )

    # VMEM estimate for the fused path: resident per-channel output block
    # (+ writeback buffer), f32 temporaries of the finalize, double-buffered
    # x slabs, and the resident projection matrix.
    resident_bytes = (
        2 * n * t * w * x.dtype.itemsize
        + 2 * n * t * w * 4
        + 2 * n_blk * t * v * x.dtype.itemsize
        + 2 * v * w * 4
    )
    fits = resident_bytes <= vmem_limit // 2 and n * t <= 16384

    if fits and not force_two_pass:
        kernel = functools.partial(
            _fused_kernel,
            n_blk=n_blk,
            inv_count=1.0 / float(count),
            eps=float(eps),
            mxu_dtype=mxu_dtype,
        )
        return pl.pallas_call(
            kernel,
            out_shape=jax.ShapeDtypeStruct((n, c, t, w), out_dtype),
            grid=(c, nsteps),
            in_specs=[
                pl.BlockSpec((n_blk, 1, t, v), lambda ci, ni: (ni, ci, 0, 0)),
                pl.BlockSpec((v, w), lambda ci, ni: (0, 0)),
                pl.BlockSpec(memory_space=pltpu.MemorySpace.SMEM),   # gamma
                pl.BlockSpec(memory_space=pltpu.MemorySpace.SMEM),   # beta
            ],
            out_specs=pl.BlockSpec((n, 1, t, w), lambda ci, ni: (0, ci, 0, 0)),
            compiler_params=pltpu.CompilerParams(
                dimension_semantics=("parallel", "arbitrary"),
                vmem_limit_bytes=vmem_limit,
            ),
            cost_estimate=pl.CostEstimate(
                flops=flops, transcendentals=c, bytes_accessed=bytes_accessed
            ),
        )(x, p, g, b)

    # ---- Fallback: per-channel block too large for resident VMEM (or forced) ----
    # Batch statistics in XLA without materializing y:
    #   sum(y)   = sum_v sum_{n,t} x[...,v] * sum_w P[v,w]
    #   sum(y^2) = sum_{v,u} Gram[c,v,u] * (P P^T)[v,u],  Gram[c] = x_c^T x_c over (N,T)
    sx = jnp.sum(x, axis=(0, 2), dtype=jnp.float32)                           # (C, V)
    gram = jnp.einsum("nctv,nctu->cvu", x, x,
                      preferred_element_type=jnp.float32)                     # (C, V, V)
    sum_y = sx @ jnp.sum(p, axis=1)                                           # (C,)
    sumsq_y = jnp.einsum("cvu,vu->c", gram, p @ p.T)                          # (C,)
    mean = sum_y / count
    var = jnp.maximum(sumsq_y / count - mean * mean, 0.0)
    scale = g * jax.lax.rsqrt(var + eps)
    shift = b - mean * scale

    kernel = functools.partial(_apply_kernel, n_blk=n_blk, mxu_dtype=mxu_dtype)
    return pl.pallas_call(
        kernel,
        out_shape=jax.ShapeDtypeStruct((n, c, t, w), out_dtype),
        grid=(c, nsteps),
        in_specs=[
            pl.BlockSpec((n_blk, 1, t, v), lambda ci, ni: (ni, ci, 0, 0)),
            pl.BlockSpec((v, w), lambda ci, ni: (0, 0)),
            pl.BlockSpec(memory_space=pltpu.MemorySpace.SMEM),   # scale
            pl.BlockSpec(memory_space=pltpu.MemorySpace.SMEM),   # shift
        ],
        out_specs=pl.BlockSpec((n_blk, 1, t, w), lambda ci, ni: (ni, ci, 0, 0)),
        compiler_params=pltpu.CompilerParams(
            dimension_semantics=("parallel", "parallel"),
            vmem_limit_bytes=vmem_limit,
        ),
        cost_estimate=pl.CostEstimate(
            flops=flops, transcendentals=0, bytes_accessed=bytes_accessed
        ),
    )(x, p, scale, shift)


def _reference(x, proj_mat, gamma, beta, eps=1e-5):
    n, c, t, v = x.shape
    y = (x.reshape(n, c * t, v) @ proj_mat).reshape(n, c, t, -1)
    mean = jnp.mean(y, axis=(0, 2, 3), keepdims=True)
    var = jnp.mean((y - mean) ** 2, axis=(0, 2, 3), keepdims=True)
    return (y - mean) / jnp.sqrt(var + eps) * gamma.reshape(1, c, 1, 1) + beta.reshape(
        1, c, 1, 1
    )


if __name__ == "__main__":
    key = jax.random.PRNGKey(0)
    k_x, k_p = jax.random.split(key)

    # Small shapes consistent with the module defaults: N=2, C=4, T=8, V=25 -> W=15.
    N, C, T = 2, 4, 8
    in_joints, out_joints = 25, 15

    x = jax.random.normal(k_x, (N, C, T, in_joints), dtype=jnp.float32)

    # Parameter init matching __init__:
    #   proj_mat: kaiming_normal_ on (in_joints, out_joints) -> std = sqrt(2 / fan_in)
    #   bn: constant_init(bn, 1) -> weight = 1, bias = 0
    std = (2.0 / out_joints) ** 0.5
    proj_mat = std * jax.random.normal(k_p, (in_joints, out_joints), dtype=jnp.float32)
    gamma = jnp.ones((C,), dtype=jnp.float32)
    beta = jnp.zeros((C,), dtype=jnp.float32)

    ref = _reference(x, proj_mat, gamma, beta)

    # Fused single-pass path (default whenever the per-channel block fits VMEM).
    out = jax.block_until_ready(joint_project(x, proj_mat, gamma, beta))
    assert out.shape == (N, C, T, out_joints)
    max_err = float(jnp.max(jnp.abs(out - ref)))
    assert jnp.allclose(out, ref, atol=1e-4, rtol=1e-4), max_err

    # Two-pass fallback path (auto-selected for very large N*T, e.g. on v7x);
    # exercised explicitly here so the code path is known-good.
    out2 = jax.block_until_ready(
        joint_project(x, proj_mat, gamma, beta, force_two_pass=True)
    )
    max_err2 = float(jnp.max(jnp.abs(out2 - ref)))
    assert jnp.allclose(out2, ref, atol=1e-4, rtol=1e-4), max_err2

    print("KERNEL_OK")
</pallas_src>

<mosaic_0001>
module attributes {stable_mosaic.version = 11 : i64} {
  func.func @_fused_kernel(%arg0: i32, %arg1: i32, %arg2: memref<2x1x8x25xf32, #tpu.memory_space<vmem>>, %arg3: memref<25x15xf32, #tpu.memory_space<vmem>>, %arg4: memref<4xf32, #tpu.memory_space<smem>>, %arg5: memref<4xf32, #tpu.memory_space<smem>>, %arg6: memref<2x1x8x15xf32, #tpu.memory_space<vmem>>) attributes {dimension_semantics = [#tpu.dimension_semantics<parallel>, #tpu.dimension_semantics<arbitrary>], iteration_bounds = array<i64: 4, 1>, scalar_prefetch = 0 : i64, scratch_operands = 0 : i64, tpu.core_type = #tpu.core_type<tc>, window_params = [{transform_indices = @transform_0, window_bounds = array<i64: 2, 1, 8, 25>}, {pipeline_mode = #tpu.pipeline_mode<synchronous>, transform_indices = @transform_1, window_bounds = array<i64: 25, 15>}, {transform_indices = @transform_2, window_bounds = array<i64: 4>}, {transform_indices = @transform_3, window_bounds = array<i64: 4>}, {transform_indices = @transform_4, window_bounds = array<i64: 2, 1, 8, 15>}]} {
    %c0 = arith.constant 0 : index
    %c0_0 = arith.constant 0 : index
    %0 = vector.load %arg3[%c0, %c0_0] : memref<25x15xf32, #tpu.memory_space<vmem>>, vector<25x15xf32>
    %c2_i32 = arith.constant 2 : i32
    %1 = arith.muli %arg1, %c2_i32 : i32
    %2 = tpu.assume_multiple %1, 2 : i32
    %c0_1 = arith.constant 0 : index
    %c0_2 = arith.constant 0 : index
    %c0_3 = arith.constant 0 : index
    %c0_4 = arith.constant 0 : index
    %3 = vector.load %arg2[%c0_1, %c0_2, %c0_3, %c0_4] : memref<2x1x8x25xf32, #tpu.memory_space<vmem>>, vector<1x1x8x25xf32>
    %4 = vector.shape_cast %3 : vector<1x1x8x25xf32> to vector<8x25xf32>
    %cst = arith.constant dense<0.000000e+00> : vector<8x15xf32>
    %5 = tpu.matmul %4, %0, %cst {dimension_numbers = #tpu.dot_dimension_numbers<[1], [0], [0], [1], [0, 0, 1, 1], [], []>} : vector<8x25xf32>, vector<25x15xf32>, vector<8x15xf32> -> vector<8x15xf32>
    %c0_i32 = arith.constant 0 : i32
    %6 = arith.addi %2, %c0_i32 : i32
    %7 = arith.index_cast %6 : i32 to index
    %c0_5 = arith.constant 0 : index
    %c0_6 = arith.constant 0 : index
    %c0_7 = arith.constant 0 : index
    %8 = vector.load %arg6[%7, %c0_5, %c0_6, %c0_7] : memref<2x1x8x15xf32, #tpu.memory_space<vmem>>, vector<1x1x8x15xf32>
    %9 = vector.shape_cast %8 : vector<1x1x8x15xf32> to vector<8x15xf32>
    %10 = vector.shape_cast %5 : vector<8x15xf32> to vector<1x1x8x15xf32>
    tpu.vector_store %arg6[%7, %c0_5, %c0_6, %c0_7], %10 {strides = array<i32>} : memref<2x1x8x15xf32, #tpu.memory_space<vmem>>, vector<1x1x8x15xf32>,
    %c1 = arith.constant 1 : index
    %c0_8 = arith.constant 0 : index
    %c0_9 = arith.constant 0 : index
    %c0_10 = arith.constant 0 : index
    %11 = vector.load %arg2[%c1, %c0_8, %c0_9, %c0_10] : memref<2x1x8x25xf32, #tpu.memory_space<vmem>>, vector<1x1x8x25xf32>
    %12 = vector.shape_cast %11 : vector<1x1x8x25xf32> to vector<8x25xf32>
    %cst_11 = arith.constant dense<0.000000e+00> : vector<8x15xf32>
    %13 = tpu.matmul %12, %0, %cst_11 {dimension_numbers = #tpu.dot_dimension_numbers<[1], [0], [0], [1], [0, 0, 1, 1], [], []>} : vector<8x25xf32>, vector<25x15xf32>, vector<8x15xf32> -> vector<8x15xf32>
    %c1_i32 = arith.constant 1 : i32
    %14 = arith.addi %2, %c1_i32 : i32
    %15 = arith.index_cast %14 : i32 to index
    %c0_12 = arith.constant 0 : index
    %c0_13 = arith.constant 0 : index
    %c0_14 = arith.constant 0 : index
    %16 = vector.load %arg6[%15, %c0_12, %c0_13, %c0_14] : memref<2x1x8x15xf32, #tpu.memory_space<vmem>>, vector<1x1x8x15xf32>
    %17 = vector.shape_cast %16 : vector<1x1x8x15xf32> to vector<8x15xf32>
    %18 = vector.shape_cast %13 : vector<8x15xf32> to vector<1x1x8x15xf32>
    tpu.vector_store %arg6[%15, %c0_12, %c0_13, %c0_14], %18 {strides = array<i32>} : memref<2x1x8x15xf32, #tpu.memory_space<vmem>>, vector<1x1x8x15xf32>,
    %c0_i32_15 = arith.constant 0 : i32
    %19 = arith.cmpi eq, %arg1, %c0_i32_15 : i32
    %20 = arith.extui %19 : i1 to i32
    %c0_i32_16 = arith.constant 0 : i32
    %21 = arith.cmpi ne, %20, %c0_i32_16 : i32
    scf.if %21 {
      %c0_17 = arith.constant 0 : index
      %c0_18 = arith.constant 0 : index
      %c0_19 = arith.constant 0 : index
      %c0_20 = arith.constant 0 : index
      %22 = vector.load %arg6[%c0_17, %c0_18, %c0_19, %c0_20] : memref<2x1x8x15xf32, #tpu.memory_space<vmem>>, vector<2x1x8x15xf32>
      %23 = vector.shape_cast %22 : vector<2x1x8x15xf32> to vector<1x2x1x8x15xf32>
      %cst_21 = arith.constant dense<0.000000e+00> : vector<1xf32>
      %24 = vector.multi_reduction <add>, %23, %cst_21 [1, 2, 3, 4] : vector<1x2x1x8x15xf32> to vector<1xf32>
      %25 = vector.shape_cast %24 : vector<1xf32> to vector<1x1x1x1x1xf32>
      %26 = vector.extract %25[0, 0, 0, 0, 0] : f32 from vector<1x1x1x1x1xf32>
      %cst_22 = arith.constant 0.00416666688 : f32
      %27 = arith.mulf %26, %cst_22 : f32
      %28 = vector.broadcast %27 : f32 to vector<2x1x8x15xf32>
      %29 = arith.subf %22, %28 : vector<2x1x8x15xf32>
      %30 = arith.mulf %29, %29 : vector<2x1x8x15xf32>
      %31 = vector.shape_cast %30 : vector<2x1x8x15xf32> to vector<1x2x1x8x15xf32>
      %cst_23 = arith.constant dense<0.000000e+00> : vector<1xf32>
      %32 = vector.multi_reduction <add>, %31, %cst_23 [1, 2, 3, 4] : vector<1x2x1x8x15xf32> to vector<1xf32>
      %33 = vector.shape_cast %32 : vector<1xf32> to vector<1x1x1x1x1xf32>
      %34 = vector.extract %33[0, 0, 0, 0, 0] : f32 from vector<1x1x1x1x1xf32>
      %cst_24 = arith.constant 0.00416666688 : f32
      %35 = arith.mulf %34, %cst_24 : f32
      %36 = arith.index_cast %arg0 : i32 to index
      %37 = memref.load %arg4[%36] : memref<4xf32, #tpu.memory_space<smem>>
      %cst_25 = arith.constant 9.99999974E-6 : f32
      %38 = arith.addf %35, %cst_25 : f32
      %39 = math.rsqrt %38 : f32
      %40 = arith.mulf %37, %39 : f32
      %41 = vector.broadcast %40 : f32 to vector<2x1x8x15xf32>
      %42 = arith.mulf %29, %41 : vector<2x1x8x15xf32>
      %43 = arith.index_cast %arg0 : i32 to index
      %44 = memref.load %arg5[%43] : memref<4xf32, #tpu.memory_space<smem>>
      %45 = vector.broadcast %44 : f32 to vector<2x1x8x15xf32>
      %46 = arith.addf %42, %45 : vector<2x1x8x15xf32>
      %c0_26 = arith.constant 0 : index
      %c0_27 = arith.constant 0 : index
      %c0_28 = arith.constant 0 : index
      %c0_29 = arith.constant 0 : index
      %47 = vector.load %arg6[%c0_26, %c0_27, %c0_28, %c0_29] : memref<2x1x8x15xf32, #tpu.memory_space<vmem>>, vector<2x1x8x15xf32>
      tpu.vector_store %arg6[%c0_26, %c0_27, %c0_28, %c0_29], %46 {strides = array<i32>} : memref<2x1x8x15xf32, #tpu.memory_space<vmem>>, vector<2x1x8x15xf32>,
    } else {
    }
    return
  }
  func.func @transform_0(%arg0: i32, %arg1: i32) -> (i32, i32, i32, i32) {
    %c0_i32 = arith.constant 0 : i32
    %c0_i32_0 = arith.constant 0 : i32
    %c0_i32_1 = arith.constant 0 : i32
    return %arg1, %arg0, %c0_i32, %c0_i32_0 : i32, i32, i32, i32
  }
  func.func @transform_1(%arg0: i32, %arg1: i32) -> (i32, i32) {
    %c0_i32 = arith.constant 0 : i32
    %c0_i32_0 = arith.constant 0 : i32
    %c0_i32_1 = arith.constant 0 : i32
    return %c0_i32, %c0_i32_0 : i32, i32
  }
  func.func @transform_2(%arg0: i32, %arg1: i32) -> i32 {
    %c0_i32 = arith.constant 0 : i32
    %c0_i32_0 = arith.constant 0 : i32
    return %c0_i32 : i32
  }
  func.func @transform_3(%arg0: i32, %arg1: i32) -> i32 {
    %c0_i32 = arith.constant 0 : i32
    %c0_i32_0 = arith.constant 0 : i32
    return %c0_i32 : i32
  }
  func.func @transform_4(%arg0: i32, %arg1: i32) -> (i32, i32, i32, i32) {
    %c0_i32 = arith.constant 0 : i32
    %c0_i32_0 = arith.constant 0 : i32
    %c0_i32_1 = arith.constant 0 : i32
    %c0_i32_2 = arith.constant 0 : i32
    return %c0_i32, %arg0, %c0_i32_0, %c0_i32_1 : i32, i32, i32, i32
  }
}

</mosaic_0001>

<bundles_post_ra>
// kernel: tpu_custom_call.1
= control target key start
LH: loop header
LB: loop body
LE: loop exit
PB: predicated region body
PF: predicated region fallthrough
CT: control target
= control target key end

     0   :  { %9 = vsyncpa [#allocation3], 0  ;;  %s1318_s0 = inlined_call_operand.hbm [shape: f32[2,4,8,25], index: 0, kind: input, shape index: {}]   ;;  %s1319_s1 = inlined_call_operand.hbm [shape: f32[25,15], index: 1, kind: input, shape index: {}]   ;;  %s1320_s2 = inlined_call_operand.hbm [shape: f32[4], index: 2, kind: input, shape index: {}]   ;;  %s1321_s3 = inlined_call_operand.hbm [shape: f32[4], index: 3, kind: input, shape index: {}]   ;;  %s1322_s4 = inlined_call_operand.hbm [shape: f32[2,4,8,15], index: 4, kind: output, shape index: {}]  }
   0x1   :  { %11 = vsyncpa [#allocation3 + $0x1], 0 }
   0x2   :  { %12 = vsyncpa [#allocation7], 0 }
   0x3   :  { %13 = vsyncpa [#allocation5], 0 }
   0x4   :  { %14 = vsyncpa [#allocation10], 0 }
   0x5   :  { %15 = vsyncpa [#allocation4], 0 }
   0x6   :  { %17 = vsyncpa [#allocation4 + $0x1], 0  ;;  %s1026_s15 = smov 0   ;;  %s1028_s16 = smov 0  }
   0x7   :  { %s1030_s17 = smov 0   ;;  %s1032_s18 = smov 0  }
   0x8   :  { %s1034_s19 = smov 0   ;;  %s1036_s20 = smov 0  }
   0x9 LB: > { %s624_s21 = sadd.s32 4294967295, %s984_s20   ;;  %s625_s22 = sadd.s32 4294967294, %s984_s20   ;;  %s984_s20 = sphi %s1036_s20, %s23_s20   ;;  %s980_s19 = sphi %s1034_s19, %s1351_s19   ;;  %s976_s18 = sphi %s1032_s18, %s1350_s18   ;;  %s972_s17 = sphi %s1030_s17, %s1349_s17   ;;  %s968_s16 = sphi %s1028_s16, %s1348_s16   ;;  %s964_s15 = sphi %s1026_s15, %s1347_s15  }
   0xa   : > { %p51_p0 = scmp.ne.s32.totalorder %s972_s17, %s968_s16  ;;  %p52_p1 = scmp.eq.s32.totalorder %s984_s20, 0 }
   0xb   : > { %p57_p2 = scmp.ne.s32.totalorder %s968_s16, %s964_s15  ;;  %p1063_p3 = scmp.eq.s32.totalorder %s624_s21, 0 }
   0xc   : > { %p1067_p4 = por %p52_p1, %p51_p0  ;;  %p144_p5 = scmp.eq.s32.totalorder %s624_s21, 3 }
   0xd   : > { %s1331_s23 = scalar_select %p1063_p3, 1, 0 }
   0xe   : > { %p1073_p6 = por %p1063_p3, %p57_p2  ;;  %p150_p7 = scmp.eq.s32.totalorder %s625_s22, 3 }
   0xf   : > { %p1077_p8 = por %p144_p5, %p51_p0  ;;  %p626_p9 = scmp.ge.s32.totalorder %s984_s20, 1 }
  0x10   : > { %s1333_s25 = scalar_select %p1073_p6, 1, 0 }
  0x11   : > { %s1334_s26 = scalar_select %p1077_p8, 1, 0 }
  0x12   : > { %p1082_p10 = por %p150_p7, %p57_p2  ;;  %p157_p11 = scmp.lt.s32.totalorder %s984_s20, 5 }
  0x13   : > { %s986_s29 = smov [#allocation6]   ;;  %p738_p0 = scmp.lt.s32.totalorder %s984_s20, 4 }
  0x14   : > { %s1335_s27 = scalar_select %p1082_p10, 1, 0 }
  0x15   : > { %p1087_p12 = pnand %p626_p9, %p157_p11  ;;  %s169_s30 = sshll.u32 %s986_s29, 4  ;;  %s170_s30 = int_to_ptr.vmem [resolvable:$true] %s169_s30 }
  0x16   : > { %p1102_p2 = pnand %p738_p0, %p1067_p4  ;;  %s806_s9 = scalar_lea.hbm %s1319_s1, 512 }
  0x17   : > { %s1336_s28 = scalar_select %p1087_p12, 1, 0 }
  0x18   : > { %p717_p13 = pneg %p1087_p12  ;;  %p807_p5 = scmp.ne.s32.totalorder %s1319_s1, %s806_s9 }
  0x19   : > { %s1338_s6 = scalar_select %p1102_p2, 1, 0 }
  0x1a   : > { %p1096_p1 = pnand %p717_p13, %p1063_p3  ;;  %p813_p4 = scmp.lt.u32.totalorder %s806_s9, %s1319_s1 }
  0x1c   : > { %p808_p7 = pneg %p1096_p1 }
  0x1e   : > { %p809_p9 = pnand %p808_p7, %p807_p5 }
  0x20   : > { %p810_p11 = pneg %p809_p9 }
  0x22   : > { %p815_p13 = pnand %p813_p4, %p810_p11 }
  0x24   : > { %818 = shalt.err (!%p815_p13)
}
  0x25   : > { %s819_s14 = scalar_lea.vmem %s170_s30, 512  ;;  %p827_p3 = scmp.lt.s32.totalorder %s170_s30, %s170_s30 }
  0x26   : > { %p820_p0 = scmp.ne.s32.totalorder %s170_s30, %s819_s14  ;;  %p828_p6 = scmp.lt.s32.totalorder %s819_s14, %s819_s14 }
  0x28   : > { %p822_p10 = pnand %p820_p0, %p808_p7  ;;  %p829_p12 = por %p828_p6, %p827_p3 }
  0x2a   : > { %p823_p8 = pneg %p822_p10 }
  0x2c   : > { %p830_p2 = pnand %p829_p12, %p823_p8 }
  0x2e   : > { %833 = shalt.err (!%p830_p2)
}
  0x2f   : > { %s1329_s21 = smov 128   ;;  %s1330_s22 = smov 8  }
  0x30   : > { %720 = dma.hbm_to_vmem [thread:$0]  (!%p1096_p1), %s1319_s1, 512, %s170_s30, [#allocation7], %s1329_s21, %s1329_s21, %s1330_s22  }
  0x31   : > { %s834_s9 = scalar_lea.hbm %s1320_s2, 16 }
  0x32   : > { %p835_p3 = scmp.ne.s32.totalorder %s1320_s2, %s834_s9  ;;  %p841_p10 = scmp.lt.u32.totalorder %s834_s9, %s1320_s2 }
  0x34   : > { %p837_p6 = pnand %p835_p3, %p808_p7 }
  0x36   : > { %p838_p8 = pneg %p837_p6 }
  0x38   : > { %p843_p12 = pnand %p841_p10, %p838_p8 }
  0x3a   : > { %846 = shalt.err (!%p843_p12)
}
  0x3b   : > { %s989_s14 = smov [#allocation8]   ;;  %s847_s8 = scalar_lea.hbm %s1321_s3, 16 }
  0x3c   : > { %723 = dma.hbm_to_smem (!%p1096_p1), %s1320_s2, 16, %s989_s14, [#allocation5]  }
  0x3d   : > { %p848_p2 = scmp.ne.s32.totalorder %s1321_s3, %s847_s8  ;;  %p854_p11 = scmp.lt.u32.totalorder %s847_s8, %s1321_s3 }
  0x3f   : > { %p850_p5 = pnand %p848_p2, %p808_p7 }
  0x41   : > { %p851_p9 = pneg %p850_p5 }
  0x43   : > { %p856_p4 = pnand %p854_p11, %p851_p9 }
  0x45   : > { %859 = shalt.err (!%p856_p4)
}
  0x46   : > { %s990_s13 = smov [#allocation9]   ;;  %s35_s24 = sadd.s32 1, %s980_s19 }
  0x47   : > { %726 = dma.hbm_to_smem (!%p1096_p1), %s1321_s3, 16, %s990_s13, [#allocation10]  }
  0x48   : > { %s44_s29 = sadd.s32 1, %s972_s17  ;;  %p37_p7 = scmp.ge.s32.totalorder %s35_s24, 4 }
  0x49   : > { %s201_s7 = sand.u32 1, %s972_s17   ;;  %s632_s5 = sshll.u32 %s980_s19, 7 }
  0x4a   : > { %s631_s8 = sshll.u32 %s201_s7, 4  ;;  %s1353_s24 = smov (%p37_p7, %s35_s24), 0 }
  0x4b   : > { %s40_s10 = ssub.s32 %s980_s19, %s1353_s24  ;;  %s1176_s12 = scalar_lea.hbm %s1318_s0, %s632_s5 }
  0x4c   : > { %p42_p1 = scmp.eq.s32.totalorder %s40_s10, 0  ;;  %s205_s13 = scalar_lea.vmem [#allocation2], %s631_s8 }
  0x4d   : > { %s214_s14 = sshll.u32 %s205_s13, 4  ;;  %s1183_s21 = scalar_lea.sflag [#allocation3], %s201_s7  ;;  %s1178_s14 = int_to_ptr.vmem [resolvable:$true] %s214_s14 }
  0x4e   : > { %s1181_s30 = scalar_select %p42_p1, %s972_s17, %s44_s29  }
  0x4f   : > { %s860_s22 = scalar_lea.hbm %s1176_s12, 256  ;;  %p1339_p0 = scmp.ne.s32.totalorder %s1338_s6, 0 }
  0x50   : > { %p861_p13 = scmp.ne.s32.totalorder %s1176_s12, %s860_s22  ;;  %s865_s10 = scalar_lea.hbm %s1318_s0, 1024 }
  0x51   : > { %p862_p3 = pneg %p1339_p0  ;;  %p866_p10 = scmp.lt.u32.totalorder %s1176_s12, %s1318_s0 }
  0x52   : > { %p867_p12 = scmp.lt.u32.totalorder %s865_s10, %s860_s22  ;;  %p869_p5 = scmp.lt.u32.totalorder %s860_s22, %s1176_s12 }
  0x53   : > { %p863_p6 = pnand %p862_p3, %p861_p13 }
  0x54   : > { %p868_p2 = por %p867_p12, %p866_p10 }
  0x55   : > { %p864_p8 = pneg %p863_p6 }
  0x56   : > { %p870_p9 = por %p869_p5, %p868_p2 }
  0x58   : > { %p871_p11 = pnand %p870_p9, %p864_p8 }
  0x5a   : > { %874 = shalt.err (!%p871_p11)
}
  0x5b   : > { %s875_s29 = scalar_lea.vmem %s1178_s14, 256  ;;  %s991_s7 = smov [#allocation2]  }
  0x5c   : > { %p876_p4 = scmp.ne.s32.totalorder %s1178_s14, %s875_s29  ;;  %s880_s13 = sshll.u32 %s991_s7, 4  ;;  %s881_s13 = int_to_ptr.vmem [resolvable:$false] %s880_s13 }
  0x5d   : > { %s882_s5 = scalar_lea.vmem %s881_s13, 512  ;;  %p883_p13 = scmp.lt.s32.totalorder %s1178_s14, %s881_s13 }
  0x5e   : > { %p878_p7 = pnand %p876_p4, %p862_p3  ;;  %p884_p6 = scmp.lt.s32.totalorder %s882_s5, %s875_s29 }
  0x60   : > { %p879_p1 = pneg %p878_p7  ;;  %p885_p10 = por %p884_p6, %p883_p13 }
  0x62   : > { %p886_p12 = pnand %p885_p10, %p879_p1 }
  0x64   : > { %889 = shalt.err (!%p886_p12)
}
  0x65   : > { %s992_s22 = smov 512   ;;  %s1340_s11 = smov 8  }
  0x66   : > { %s1341_s10 = smov 128   ;;  %p1342_p3 = scmp.ne.s32.totalorder %s1336_s28, 0 }
  0x67   : > { %730 = dma.hbm_to_vmem [thread:$0]  (!%p1339_p0), %s1176_s12, 256, %s1178_s14, %s1183_s21, %s992_s22, %s1341_s10, %s1340_s11  }
  0x68   : > { %226 = sbr.rel (%p1342_p3) target bundleno = 861 (0x35d), region = 36  ;;  %s1216_s8 = sand.u32 (!%p1342_p3), 1, %s968_s16  }
  0x69   : > { %s634_s9 = sshll.u32 (!%p1342_p3), %s1216_s8, 4  ;;  %s229_s29 = scalar_lea.sflag (!%p1342_p3), [#allocation3], %s1216_s8 }
  0x6a   : > { %s1222_s6 = scalar_lea.vmem (!%p1342_p3), [#allocation2], %s634_s9  ;;  %p1343_p8 = scmp.ne.s32.totalorder (!%p1342_p3), %s1333_s25, 0 }
  0x6f   : > { %943 = dma.done.wait (%p1343_p8), %s229_s29, 256  }
  0x70   : > { %945 = vsyncadd (%p1343_p8), %s229_s29, 4294967040  ;;  %p1344_p0 = scmp.ne.s32.totalorder %s1331_s23, 0 }
  0x72   : > { %947 = dma.done.wait (%p1344_p0), [#allocation7], 512  }
  0x73   : > { %949 = vsyncadd (%p1344_p0), [#allocation7], 4294966784 }
  0x74   : > { %951 = dma.done.wait (%p1344_p0), [#allocation5], 16  }
  0x75   : > { %953 = vsyncadd (%p1344_p0), [#allocation5], 4294967280 }
  0x76   : > { %955 = dma.done.wait (%p1344_p0), [#allocation10], 16  }
  0x77   : > { %957 = vsyncadd (%p1344_p0), [#allocation10], 4294967280 }
  0x78   : > { %249 = sfence }
  0x79   : > { %v271_v0 = vld [vmem:[#allocation6] sm:$0xff]  ;;  %v272_v1 = vld [vmem:[#allocation6 + $0x8] sm:$0xff]  ;;  %v273_v2 = vld [vmem:[#allocation6 + $0x10] sm:$0xff]  ;;  %vm281_vm0 = vcmask 1040384   ;;  %v993_v3 = vmov 0.0|0.0   ;;  %vm994_vm1 = vmmov 0  }
  0x7a   : > { %681 = vmatprep.subr.bf16.mxu0 %v993_v3  ;;  %688 = vmatprep.subr.bf16.mxu1 %v993_v3  ;;  %v682_v4 = vpack.c.bf16 %v272_v1, %v271_v0  ;;  %v274_v5 = vld [vmem:[#allocation6 + $0x18] sm:$0x1]  ;;  %v995_v6 = vmov 0.0   ;;  %vm996_vm2 = vmmov 1   ;;  %v276_v8 = vld [vmem:[%s1222_s6] sm:$0xff]  ;;  %vm277_vm4 = vcmask 203776  }
  0x7b   : > { %667 = vmatprep.mubr.msk.f32.mxu0 %vm994_vm1, %v995_v6  ;;  %678 = vmatprep.mubr.msk.f32.mxu1 %vm994_vm1, %v995_v6  ;;  %v685_v7 = vpack.c.bf16 %v274_v5, %v273_v2  ;;  %vm686_vm3 = vmpackc.low %vm281_vm0, %vm996_vm2  ;;  %v641_v9 = vld [vmem:[%s1222_s6 + $0x8] sm:$0xff]  ;;  %vm357_vm5 = vcmask 121856   ;;  %s1245_s23 = scalar_lea.vmem [#allocation11], %s634_s9  ;;  %s475_s7 = sld [smem:[#allocation8 + %s976_s18]] }
  0x7c   : > { %683 = vmatpush3.bf16.msra.mxu0 %v682_v4  ;;  %690 = vmatpush3.bf16.msra.mxu1 %v682_v4  ;;  %s484_s13 = sld [smem:[#allocation9 + %s976_s18]]  ;;  %s646_s11 = sshll.u32 %s976_s18, 7 }
  0x7d   : > { %684 = vmatprep.subr.bf16.mxu0 %v993_v3  ;;  %691 = vmatprep.subr.bf16.mxu1 %v993_v3  ;;  %s503_s10 = sshll.u32 %s1245_s23, 4  ;;  %s1264_s6 = scalar_lea.hbm %s1322_s4, %s646_s11  ;;  %s1266_s10 = int_to_ptr.vmem [resolvable:$true] %s503_s10 }
  0x7e   : > { %s491_s18 = scalar_lea.sflag [#allocation4], %s1216_s8  ;;  %p1345_p5 = scmp.ne.s32.totalorder %s1334_s26, 0 }
  0x80   : > { %687 = vmatpush3.bf16.msk.msra.mxu0 %vm686_vm3, %v685_v7  ;;  %694 = vmatpush3.bf16.msk.msra.mxu1 %vm686_vm3, %v685_v7 }
  0x82   : > { %v485_v44 = vstv %s484_s13 }
  0x83   : > { %668 = vmatmul.mubr.msk.f32.vlgmr.msra.gmra.mrb[0].mxu0 %vm277_vm4, %v276_v8  ;;  %679 = vmatmul.mubr.msk.f32.vlgmr.msra.gmra.mrb[0].mxu1 %vm277_vm4, %v641_v9 }
 0x156   : > { %v351_v10 = vpop.f32.mrb[0].mxu0  ;;  %v430_v11 = vpop.f32.mrb[0].mxu1 }
 0x157   : > { %358 = vst.msk [vmem:[%s1245_s23] sm:$0xff] %vm357_vm5, %v351_v10  ;;  %644 = vst.msk [vmem:[%s1245_s23 + $0x8] sm:$0xff] %vm357_vm5, %v430_v11  ;;  %v669_v12 = vpop.f32.mrb[1].mxu0  ;;  %v680_v13 = vpop.f32.mrb[1].mxu1 }
 0x15e   : > { %v442_v14 = vld [vmem:[%s1245_s23] sm:$0xff]  ;;  %v443_v15 = vld [vmem:[%s1245_s23 + $0x8] sm:$0xff] }
 0x15f   : > { %v444_v16 = vsel %vm357_vm5, %v442_v14, 0.0  ;;  %v445_v17 = vsel %vm357_vm5, %v443_v15, 0.0 }
 0x160   : > { %v446_v18 = vadd.f32 %v445_v17, %v444_v16 }
 0x162   : > { %447 = vadd.xlane.f32.xlu0 %v446_v18 }
 0x1ef   : > { %v448_v19 = vpop.xlane.xlu0 %447 }
 0x1f0   : > { %v449_v20 = vrot.slane %v448_v19, 4 }
 0x1f2   : > { %v450_v21 = vadd.f32 %v449_v20, %v448_v19 }
 0x1f4   : > { %v451_v22 = vrot.slane %v450_v21, 2 }
 0x1f6   : > { %v452_v23 = vadd.f32 %v451_v22, %v450_v21 }
 0x1f8   : > { %v453_v24 = vrot.slane %v452_v23, 1 }
 0x1fa   : > { %v454_v25 = vadd.f32 %v453_v24, %v452_v23 }
 0x1fc   : > { %695 = vpush %v454_v25 }
 0x22d   : > { %s696_s25 = spop %695 }
 0x22e   : > { %s456_s28 = smul.f32 0.004166667, %s696_s25  ;;  %s890_s25 = scalar_lea.vmem %s1266_s10, 256 }
 0x22f   : > { %p891_p2 = scmp.ne.s32.totalorder %s1266_s10, %s890_s25 }
 0x230   : > { %v457_v26 = vstv %s456_s28  ;;  %s997_s28 = smov [#allocation11]  }
 0x231   : > { %v458_v27 = vsub.f32 %v442_v14, %v457_v26  ;;  %v459_v28 = vsub.f32 %v443_v15, %v457_v26  ;;  %p892_p9 = pnand %p891_p2, %p1345_p5 }
 0x233   : > { %v460_v29 = vmul.f32 %v458_v27, %v458_v27  ;;  %v461_v30 = vmul.f32 %v459_v28, %v459_v28  ;;  %p893_p11 = pneg %p892_p9 }
 0x235   : > { %v462_v31 = vsel %vm357_vm5, %v460_v29, 0.0  ;;  %v463_v32 = vsel %vm357_vm5, %v461_v30, 0.0 }
 0x236   : > { %v464_v33 = vadd.f32 %v463_v32, %v462_v31 }
 0x238   : > { %465 = vadd.xlane.f32.xlu0 %v464_v33 }
 0x2c5   : > { %v466_v34 = vpop.xlane.xlu0 %465 }
 0x2c6   : > { %v467_v35 = vrot.slane %v466_v34, 4 }
 0x2c8   : > { %v468_v36 = vadd.f32 %v467_v35, %v466_v34 }
 0x2ca   : > { %v469_v37 = vrot.slane %v468_v36, 2 }
 0x2cc   : > { %v470_v38 = vadd.f32 %v469_v37, %v468_v36 }
 0x2ce   : > { %v471_v39 = vrot.slane %v470_v38, 1 }
 0x2d0   : > { %v472_v40 = vadd.f32 %v471_v39, %v470_v38 }
 0x2d2   : > { %697 = vpush %v472_v40 }
 0x303   : > { %s698_s21 = spop %697 }
 0x304   : > { %s474_s12 = smul.f32 0.004166667, %s698_s21  ;;  %s894_s21 = sshll.u32 %s997_s28, 4  ;;  %s895_s21 = int_to_ptr.vmem [resolvable:$false] %s894_s21 }
 0x305   : > { %p897_p4 = scmp.lt.s32.totalorder %s1266_s10, %s895_s21 }
 0x306   : > { %s476_s14 = sadd.f32 1e-05, %s474_s12  ;;  %s896_s12 = scalar_lea.vmem %s895_s21, 512 }
 0x307   : > { %p898_p7 = scmp.lt.s32.totalorder %s896_s12, %s890_s25 }
 0x308   : > { %v477_v41 = vstv %s476_s14 }
 0x309   : > { %804 = vrsqrt.f32 %v477_v41  ;;  %p899_p1 = por %p898_p7, %p897_p4 }
 0x30b   : > { %p900_p13 = pnand %p899_p1, %p893_p11 }
 0x313   : > { %v805_v42 = vpop.eup %804 }
 0x314   : > { %699 = vpush %v805_v42 }
 0x345   : > { %s700_s5 = spop %699 }
 0x346   : > { %s480_s22 = smul.f32 %s700_s5, %s475_s7 }
 0x348   : > { %v481_v43 = vstv %s480_s22 }
 0x349   : > { %v482_v45 = vmul.f32 %v481_v43, %v458_v27  ;;  %v483_v46 = vmul.f32 %v481_v43, %v459_v28 }
 0x34b   : > { %v486_v47 = vadd.f32 %v485_v44, %v482_v45  ;;  %v487_v48 = vadd.f32 %v485_v44, %v483_v46 }
 0x34d   : > { %488 = vst.msk [vmem:[%s1245_s23] sm:$0xff] %vm357_vm5, %v486_v47  ;;  %489 = vst.msk [vmem:[%s1245_s23 + $0x8] sm:$0xff] %vm357_vm5, %v487_v48 }
 0x34e   : > { %903 = shalt.err (!%p900_p13)
}
 0x34f   : > { %s904_s23 = scalar_lea.hbm %s1264_s6, 256  ;;  %s908_s13 = scalar_lea.hbm %s1322_s4, 1024 }
 0x350   : > { %p905_p6 = scmp.ne.s32.totalorder %s1264_s6, %s904_s23  ;;  %p909_p3 = scmp.lt.u32.totalorder %s1264_s6, %s1322_s4 }
 0x351   : > { %p910_p8 = scmp.lt.u32.totalorder %s908_s13, %s904_s23  ;;  %p912_p2 = scmp.lt.u32.totalorder %s904_s23, %s1264_s6 }
 0x352   : > { %p906_p10 = pnand %p905_p6, %p1345_p5 }
 0x353   : > { %p911_p0 = por %p910_p8, %p909_p3 }
 0x354   : > { %p907_p12 = pneg %p906_p10 }
 0x355   : > { %p913_p9 = por %p912_p2, %p911_p0 }
 0x357   : > { %p914_p11 = pnand %p913_p9, %p907_p12 }
 0x359   : > { %917 = shalt.err (!%p914_p11)
}
 0x35a   : > { %s998_s11 = smov 128   ;;  %s999_s9 = smov 512  }
 0x35b   : > { %s1000_s29 = smov 8  }
 0x35c   : > { %715 = dma.vmem_to_hbm [thread:$0]  (%p1345_p5), %s1266_s10, 256, %s1264_s6, %s491_s18, %s998_s11, %s999_s9, %s1000_s29  }
 0x35d PF: > { %p742_p4 = scmp.ge.s32.totalorder %s984_s20, 2  ;;  %s518_s25 = sand.u32 1, %s964_s15  }
 0x35e   : > { %p1346_p7 = scmp.ne.s32.totalorder %s1335_s27, 0  ;;  %s519_s28 = scalar_lea.sflag [#allocation4], %s518_s25 }
 0x360   : > { %p732_p1 = pnand %p742_p4, %p1346_p7 }
 0x362   : > { %959 = dma.done.wait (!%p732_p1), %s519_s28, 256  }
 0x363   : > { %961 = vsyncadd (!%p732_p1), %s519_s28, 4294967040  ;;  %s23_s20 = sadd.s32 1, %s984_s20   ;;  %s1347_s15 = smov %s968_s16 }
 0x364   : > { %p20_p13 = scmp.ge.s32.totalorder %s23_s20, 6   ;;  %s1348_s16 = smov %s972_s17 }
 0x365   : > { %s1349_s17 = smov %s1181_s30  ;;  %s1350_s18 = smov %s980_s19 }
 0x366   : > { %s1351_s19 = smov %s1353_s24  ;;  %22 = sbr.rel (!%p20_p13) target bundleno = 9 (0x9), region = 101 }
 0x36d   :  { %524 = vsyncpa [#allocation3], 1 }
 0x36e   :  { %526 = vsyncpa [#allocation3 + $0x1], 1 }
 0x36f   :  { %527 = vsyncpa [#allocation7], 1 }
 0x370   :  { %528 = vsyncpa [#allocation4], 1 }
 0x371   :  { %530 = vsyncpa [#allocation4 + $0x1], 1 }
 0x372   :  { %531 = vsyncpa [#allocation5], 1 }
 0x373   :  { %533 = vsyncpa [#allocation5 + $0x1], 1 }
 0x374   :  { %534 = vsyncpa [#allocation10], 1 }

</bundles_post_ra>
